<compile_context>
chip_gen: v7x
topology: tpu7x:2x2x1
jax: 0.10.0
libtpu: 0.0.40
codegen_flags: <defaults>
</compile_context>

<pallas_src>
import functools
import math

import jax
import jax.numpy as jnp
from jax.experimental import pallas as pl
from jax.experimental.pallas import tpu as pltpu


def _sdpa_kernel(q_ref, k_ref, v_ref, o_ref, *, scale, scale_q):
    # Block shapes: (TG, L2, d_k).  Operands stay in their native dtype so the
    # MXU consumes bf16 directly on v6e/v7x (f32 accumulation comes from
    # preferred_element_type); all softmax math is carried out in f32.
    q = q_ref[...]
    k = k_ref[...]
    v = v_ref[...]

    if scale_q:
        # Scale the smaller operand (q when L2 > d_k) -> fewer VPU multiplies.
        q = q * jnp.asarray(scale, q.dtype)

    # scores = Q @ K^T / sqrt(d_k)  -> (TG, L2, L2)
    # einsum contracts the last dims directly: no explicit K transpose, so no
    # XLU relayout of the K tile before the MXU push.
    scores = jnp.einsum("gqd,gkd->gqk", q, k,
                        preferred_element_type=jnp.float32)
    if not scale_q:
        scores = scores * scale

    # Numerically stable softmax along the last axis, accumulated in f32.
    m = jnp.max(scores, axis=-1, keepdims=True)
    e = jnp.exp(scores - m)
    denom = jnp.sum(e, axis=-1, keepdims=True)
    # approx=True lowers to the EUP vrcp slot (otherwise idle), freeing VALU.
    attn = e * pl.reciprocal(denom, approx=True)

    # context = attn @ V  -> (TG, L2, d_k); attn is fed to the MXU in V's dtype.
    ctx = jnp.einsum("gqk,gkd->gqd", attn.astype(v.dtype), v,
                     preferred_element_type=jnp.float32)
    o_ref[...] = ctx.astype(o_ref.dtype)


def _choose_tg(G, L2, d_k, itemsize, vmem_budget_bytes):
    """Largest group tile TG (a divisor of G) whose working set fits the budget.

    Accounts for 3 input tiles + 1 output tile (double-buffered by the Pallas
    pipeline) plus the f32 in-kernel temporaries (scores/exp/attn, ctx).  The
    budget is deliberately conservative: it stays under the 16 MiB v5e default
    scoped-VMEM limit and well under v7x's 64 MiB physical VMEM.
    """
    per_group_io = 2 * 4 * L2 * d_k * itemsize          # 4 tiles, double-buffered
    per_group_tmp = 4 * (3 * L2 * L2 + 2 * L2 * d_k)    # f32 temporaries
    per_group = per_group_io + per_group_tmp
    tg = max(1, int(vmem_budget_bytes // per_group))
    tg = min(tg, G, 1024)
    while G % tg:                                        # keep the grid exact
        tg -= 1
    return tg


def scaled_dot_product_attention(Q, K, V, *, vmem_budget_bytes=12 * 1024 * 1024):
    """Q, K, V: [B, n_heads, L1, L2, d_k] -> context [B, n_heads, L1, L2, d_k]."""
    B, H, L1, L2, d_k = Q.shape
    G = B * H * L1
    scale = 1.0 / math.sqrt(d_k)
    itemsize = jnp.dtype(Q.dtype).itemsize

    qf = Q.reshape(G, L2, d_k)
    kf = K.reshape(G, L2, d_k)
    vf = V.reshape(G, L2, d_k)

    TG = _choose_tg(G, L2, d_k, itemsize, vmem_budget_bytes)
    # Scale whichever tensor is smaller: q (L2*d_k elems/group) vs scores (L2*L2).
    scale_q = L2 > d_k

    kern = functools.partial(_sdpa_kernel, scale=scale, scale_q=scale_q)
    spec = pl.BlockSpec((TG, L2, d_k), lambda i: (i, 0, 0))

    # Advisory cost estimate: two matmuls of 2*L2*L2*d_k flops per group, one
    # exp per score element, and 4 (L2, d_k) tensors moved per group.
    cost = pl.CostEstimate(
        flops=4 * G * L2 * L2 * d_k,
        transcendentals=G * L2 * L2,
        bytes_accessed=4 * G * L2 * d_k * itemsize,
    )

    out = pl.pallas_call(
        kern,
        out_shape=jax.ShapeDtypeStruct((G, L2, d_k), Q.dtype),
        grid_spec=pltpu.PrefetchScalarGridSpec(
            num_scalar_prefetch=0,
            grid=(G // TG,),
            in_specs=[spec, spec, spec],
            out_specs=spec,
        ),
        compiler_params=pltpu.CompilerParams(
            # "parallel" lets v7x's two TensorCores split the blocked-G axis.
            dimension_semantics=("parallel",),
            vmem_limit_bytes=32 * 1024 * 1024,
        ),
        cost_estimate=cost,
    )(qf, kf, vf)

    # TODO(synk): for large L2 (>= ~1k) add a KV grid axis with an online-softmax
    # VMEM accumulator instead of materializing the (TG, L2, L2) scores tile.
    # TODO(synk): for d_k < 128 a lane-dense (TG, L2*d_k) output slab would remove
    # masked partial stores; needs a minor-dim-collapsing in-kernel reshape.
    return out.reshape(B, H, L1, L2, d_k)


def _reference(Q, K, V):
    d_k = Q.shape[-1]
    q = Q.astype(jnp.float32)
    k = K.astype(jnp.float32)
    v = V.astype(jnp.float32)
    scores = jnp.einsum("bhtnd,bhtmd->bhtnm", q, k) / math.sqrt(d_k)
    attn = jax.nn.softmax(scores, axis=-1)
    return jnp.einsum("bhtnm,bhtmd->bhtnd", attn, v)


if __name__ == "__main__":
    key = jax.random.PRNGKey(0)
    kq, kk, kv = jax.random.split(key, 3)

    # Small shapes consistent with the module's 5-D Q/K/V convention.
    B, H, L1, L2, d_k = 2, 2, 4, 8, 32
    Q = jax.random.normal(kq, (B, H, L1, L2, d_k), dtype=jnp.float32)
    K = jax.random.normal(kk, (B, H, L1, L2, d_k), dtype=jnp.float32)
    V = jax.random.normal(kv, (B, H, L1, L2, d_k), dtype=jnp.float32)

    # f32 path.
    ctx = jax.block_until_ready(scaled_dot_product_attention(Q, K, V))
    ref = _reference(Q, K, V)
    assert ctx.shape == (B, H, L1, L2, d_k)
    # approx reciprocal in the softmax normalization slightly loosens tolerance.
    assert jnp.allclose(ctx, ref, atol=1e-2, rtol=1e-2)

    # bf16 path: operands go to the MXU in bf16 with f32 accumulation.
    Qb = Q.astype(jnp.bfloat16)
    Kb = K.astype(jnp.bfloat16)
    Vb = V.astype(jnp.bfloat16)
    ctx_bf16 = jax.block_until_ready(scaled_dot_product_attention(Qb, Kb, Vb))
    ref_bf16 = _reference(Qb, Kb, Vb)  # f32 math on the bf16-quantized inputs
    assert ctx_bf16.dtype == jnp.bfloat16
    assert jnp.allclose(ctx_bf16.astype(jnp.float32), ref_bf16,
                        atol=3e-2, rtol=3e-2)

    print("KERNEL_OK")
</pallas_src>

<mosaic_0001>
module attributes {stable_mosaic.version = 11 : i64} {
  func.func @_sdpa_kernel(%arg0: i32, %arg1: memref<16x8x32xf32, #tpu.memory_space<vmem>>, %arg2: memref<16x8x32xf32, #tpu.memory_space<vmem>>, %arg3: memref<16x8x32xf32, #tpu.memory_space<vmem>>, %arg4: memref<16x8x32xf32, #tpu.memory_space<vmem>>) attributes {dimension_semantics = [#tpu.dimension_semantics<parallel>], iteration_bounds = array<i64: 1>, scalar_prefetch = 0 : i64, scratch_operands = 0 : i64, tpu.core_type = #tpu.core_type<tc>, window_params = [{transform_indices = @transform_0, window_bounds = array<i64: 16, 8, 32>}, {transform_indices = @transform_1, window_bounds = array<i64: 16, 8, 32>}, {transform_indices = @transform_2, window_bounds = array<i64: 16, 8, 32>}, {transform_indices = @transform_3, window_bounds = array<i64: 16, 8, 32>}]} {
    %c0 = arith.constant 0 : index
    %c0_0 = arith.constant 0 : index
    %c0_1 = arith.constant 0 : index
    %0 = vector.load %arg1[%c0, %c0_0, %c0_1] : memref<16x8x32xf32, #tpu.memory_space<vmem>>, vector<16x8x32xf32>
    %c0_2 = arith.constant 0 : index
    %c0_3 = arith.constant 0 : index
    %c0_4 = arith.constant 0 : index
    %1 = vector.load %arg2[%c0_2, %c0_3, %c0_4] : memref<16x8x32xf32, #tpu.memory_space<vmem>>, vector<16x8x32xf32>
    %c0_5 = arith.constant 0 : index
    %c0_6 = arith.constant 0 : index
    %c0_7 = arith.constant 0 : index
    %2 = vector.load %arg3[%c0_5, %c0_6, %c0_7] : memref<16x8x32xf32, #tpu.memory_space<vmem>>, vector<16x8x32xf32>
    "tpu.trace_start"() <{level = 10 : i32, message = "gqd,gkd->gqk"}> : () -> ()
    %cst = arith.constant dense<0.000000e+00> : vector<16x8x8xf32>
    %3 = tpu.matmul %0, %1, %cst {dimension_numbers = #tpu.dot_dimension_numbers<[2], [2], [1], [1], [0, 0, 0, 1, 1, 1], [0], [0]>} : vector<16x8x32xf32>, vector<16x8x32xf32>, vector<16x8x8xf32> -> vector<16x8x8xf32>
    "tpu.trace_stop"() : () -> ()
    %cst_8 = arith.constant 0.176776692 : f32
    %4 = vector.broadcast %cst_8 : f32 to vector<16x8x8xf32>
    %5 = arith.mulf %3, %4 : vector<16x8x8xf32>
    %cst_9 = arith.constant dense<0xFF800000> : vector<16x8xf32>
    %6 = vector.multi_reduction <maximumf>, %5, %cst_9 [2] : vector<16x8x8xf32> to vector<16x8xf32>
    %7 = vector.shape_cast %6 : vector<16x8xf32> to vector<16x8x1xf32>
    %8 = vector.broadcast %7 : vector<16x8x1xf32> to vector<16x8x8xf32>
    %9 = arith.subf %5, %8 : vector<16x8x8xf32>
    %10 = math.exp %9 : vector<16x8x8xf32>
    %cst_10 = arith.constant dense<0.000000e+00> : vector<16x8xf32>
    %11 = vector.multi_reduction <add>, %10, %cst_10 [2] : vector<16x8x8xf32> to vector<16x8xf32>
    %12 = vector.shape_cast %11 : vector<16x8xf32> to vector<16x8x1xf32>
    %13 = tpu.reciprocal %12 {approx = true} : vector<16x8x1xf32> -> vector<16x8x1xf32>
    %14 = vector.broadcast %13 : vector<16x8x1xf32> to vector<16x8x8xf32>
    %15 = arith.mulf %10, %14 : vector<16x8x8xf32>
    "tpu.trace_start"() <{level = 10 : i32, message = "gqk,gkd->gqd"}> : () -> ()
    %cst_11 = arith.constant dense<0.000000e+00> : vector<16x8x32xf32>
    %16 = tpu.matmul %15, %2, %cst_11 {dimension_numbers = #tpu.dot_dimension_numbers<[2], [1], [1], [2], [0, 0, 0, 1, 1, 2], [0], [0]>} : vector<16x8x8xf32>, vector<16x8x32xf32>, vector<16x8x32xf32> -> vector<16x8x32xf32>
    "tpu.trace_stop"() : () -> ()
    %c0_12 = arith.constant 0 : index
    %c0_13 = arith.constant 0 : index
    %c0_14 = arith.constant 0 : index
    %17 = vector.load %arg4[%c0_12, %c0_13, %c0_14] : memref<16x8x32xf32, #tpu.memory_space<vmem>>, vector<16x8x32xf32>
    tpu.vector_store %arg4[%c0_12, %c0_13, %c0_14], %16 {strides = array<i32>} : memref<16x8x32xf32, #tpu.memory_space<vmem>>, vector<16x8x32xf32>,
    return
  }
  func.func @transform_0(%arg0: i32) -> (i32, i32, i32) {
    %c0_i32 = arith.constant 0 : i32
    %c0_i32_0 = arith.constant 0 : i32
    %c0_i32_1 = arith.constant 0 : i32
    return %arg0, %c0_i32, %c0_i32_0 : i32, i32, i32
  }
  func.func @transform_1(%arg0: i32) -> (i32, i32, i32) {
    %c0_i32 = arith.constant 0 : i32
    %c0_i32_0 = arith.constant 0 : i32
    %c0_i32_1 = arith.constant 0 : i32
    return %arg0, %c0_i32, %c0_i32_0 : i32, i32, i32
  }
  func.func @transform_2(%arg0: i32) -> (i32, i32, i32) {
    %c0_i32 = arith.constant 0 : i32
    %c0_i32_0 = arith.constant 0 : i32
    %c0_i32_1 = arith.constant 0 : i32
    return %arg0, %c0_i32, %c0_i32_0 : i32, i32, i32
  }
  func.func @transform_3(%arg0: i32) -> (i32, i32, i32) {
    %c0_i32 = arith.constant 0 : i32
    %c0_i32_0 = arith.constant 0 : i32
    %c0_i32_1 = arith.constant 0 : i32
    return %arg0, %c0_i32, %c0_i32_0 : i32, i32, i32
  }
}

</mosaic_0001>

<bundles_post_ra>
// kernel: tpu_custom_call.1
= control target key start
LH: loop header
LB: loop body
LE: loop exit
PB: predicated region body
PF: predicated region fallthrough
CT: control target
= control target key end

     0   :  { %8 = vsyncpa [#allocation3], 0  ;;  %s3569_s0 = inlined_call_operand.hbm [shape: f32[16,8,32], index: 0, kind: input, shape index: {}]   ;;  %s3570_s1 = inlined_call_operand.hbm [shape: f32[16,8,32], index: 1, kind: input, shape index: {}]   ;;  %s3571_s2 = inlined_call_operand.hbm [shape: f32[16,8,32], index: 2, kind: input, shape index: {}]   ;;  %s3572_s3 = inlined_call_operand.hbm [shape: f32[16,8,32], index: 3, kind: output, shape index: {}]  }
   0x1   :  { %9 = vsyncpa [#allocation6], 0 }
   0x2   :  { %10 = vsyncpa [#allocation4], 0  ;;  %s3154_s12 = smov [#allocation5]   ;;  %s3155_s14 = smov [#allocation2]  }
   0x3   :  { %s28_s13 = sshll.u32 %s3154_s12, 4  ;;  %s16_s15 = sshll.u32 %s3155_s14, 4  ;;  %s29_s13 = int_to_ptr.vmem [resolvable:$true] %s28_s13  ;;  %s3182_s15 = int_to_ptr.vmem [resolvable:$true] %s16_s15 }
   0x4   :  { %s3060_s18 = scalar_lea.hbm %s3570_s1, 2048 }
   0x5   :  { %p3061_p0 = scmp.ne.s32.totalorder %s3570_s1, %s3060_s18  ;;  %p3064_p1 = scmp.lt.u32.totalorder %s3060_s18, %s3570_s1 }
   0x7   :  { %p3066_p2 = pnand %p3064_p1, %p3061_p0 }
   0x9   :  { %3069 = shalt.err (!%p3066_p2)
}
   0xa   :  { %s3070_s23 = scalar_lea.vmem %s29_s13, 2048  ;;  %p3075_p4 = scmp.lt.s32.totalorder %s29_s13, %s29_s13 }
   0xb   :  { %p3071_p3 = scmp.ne.s32.totalorder %s29_s13, %s3070_s23  ;;  %p3076_p5 = scmp.lt.s32.totalorder %s3070_s23, %s3070_s23 }
   0xd   :  { %p3077_p6 = por %p3076_p5, %p3075_p4 }
   0xf   :  { %p3078_p7 = pnand %p3077_p6, %p3071_p3 }
  0x11   :  { %3081 = shalt.err (!%p3078_p7)
}
  0x12   :  { %s3156_s24 = smov 128   ;;  %s3157_s25 = smov 8  }
  0x13   :  { %34 = dma.hbm_to_vmem [thread:$0]  %s3570_s1, 2048, %s29_s13, [#allocation6], %s3156_s24, %s3156_s24, %s3157_s25  }
  0x14   :  { %s3082_s30 = scalar_lea.hbm %s3569_s0, 2048 }
  0x15   :  { %p3083_p8 = scmp.ne.s32.totalorder %s3569_s0, %s3082_s30  ;;  %p3086_p9 = scmp.lt.u32.totalorder %s3082_s30, %s3569_s0 }
  0x17   :  { %p3088_p10 = pnand %p3086_p9, %p3083_p8 }
  0x19   :  { %3091 = shalt.err (!%p3088_p10)
}
  0x1a   :  { %s3092_s8 = scalar_lea.vmem %s3182_s15, 2048  ;;  %p3097_p12 = scmp.lt.s32.totalorder %s3182_s15, %s3182_s15 }
  0x1b   :  { %p3093_p11 = scmp.ne.s32.totalorder %s3182_s15, %s3092_s8  ;;  %p3098_p13 = scmp.lt.s32.totalorder %s3092_s8, %s3092_s8 }
  0x1d   :  { %p3099_p0 = por %p3098_p13, %p3097_p12 }
  0x1f   :  { %p3100_p1 = pnand %p3099_p0, %p3093_p11 }
  0x21   :  { %3103 = shalt.err (!%p3100_p1)
}
  0x22   :  { %22 = dma.hbm_to_vmem [thread:$0]  %s3569_s0, 2048, %s3182_s15, [#allocation3], %s3156_s24, %s3156_s24, %s3157_s25  }
  0x23   :  { %s3158_s10 = smov [#allocation7]   ;;  %s3104_s14 = scalar_lea.hbm %s3571_s2, 2048 }
  0x24   :  { %s40_s11 = sshll.u32 %s3158_s10, 4  ;;  %p3105_p2 = scmp.ne.s32.totalorder %s3571_s2, %s3104_s14  ;;  %s41_s11 = int_to_ptr.vmem [resolvable:$true] %s40_s11 }
  0x25   :  { %p3108_p3 = scmp.lt.u32.totalorder %s3104_s14, %s3571_s2 }
  0x27   :  { %p3110_p4 = pnand %p3108_p3, %p3105_p2 }
  0x29   :  { %3113 = shalt.err (!%p3110_p4)
}
  0x2a   :  { %s3114_s20 = scalar_lea.vmem %s41_s11, 2048  ;;  %p3119_p6 = scmp.lt.s32.totalorder %s41_s11, %s41_s11 }
  0x2b   :  { %p3115_p5 = scmp.ne.s32.totalorder %s41_s11, %s3114_s20  ;;  %p3120_p7 = scmp.lt.s32.totalorder %s3114_s20, %s3114_s20 }
  0x2d   :  { %p3121_p8 = por %p3120_p7, %p3119_p6 }
  0x2f   :  { %p3122_p9 = pnand %p3121_p8, %p3115_p5 }
  0x31   :  { %3125 = shalt.err (!%p3122_p9)
}
  0x32   :  { %46 = dma.hbm_to_vmem [thread:$0]  %s3571_s2, 2048, %s41_s11, [#allocation6], %s3156_s24, %s3156_s24, %s3157_s25  }
  0x33   :  { %3148 = dma.done.wait [#allocation3], 2048  }
  0x34   :  { %3149 = vsyncadd [#allocation3], 4294965248 }
  0x35   :  { %3150 = dma.done.wait [#allocation6], 4096  }
  0x36   :  { %3151 = vsyncadd [#allocation6], 4294963200  ;;  %v3159_v0 = vmov 0.0   ;;  %vm3160_vm0 = vmmov 0   ;;  %vm104_vm1 = vcmask 261120   ;;  %v72_v1 = vld [vmem:[#allocation5] sm:$0xff] }
  0x37   :  { %2828 = vmatprep.subr.mxu0 %v3159_v0  ;;  %2830 = vmatprep.mubr.msk.f32.mxu0 %vm3160_vm0, %v3159_v0  ;;  %v73_v2 = vld [vmem:[#allocation5 + $0x8] sm:$0xff]  ;;  %v56_v3 = vld [vmem:[#allocation2] sm:$0xff]  ;;  %v74_v5 = vld [vmem:[#allocation5 + $0x10] sm:$0xff]  ;;  %vm1337_vm2 = vcmask 64512   ;;  %s3161_s2 = smov [#allocation8]  }
  0x38   :  { %2833 = vmatprep.subr.mxu1 %v3159_v0  ;;  %2835 = vmatprep.mubr.msk.f32.mxu1 %vm3160_vm0, %v3159_v0  ;;  %v57_v4 = vld [vmem:[#allocation2 + $0x8] sm:$0xff]  ;;  %v75_v6 = vld [vmem:[#allocation5 + $0x18] sm:$0xff]  ;;  %v58_v7 = vld [vmem:[#allocation2 + $0x10] sm:$0xff]  ;;  %s2703_s21 = sshll.u32 %s3161_s2, 4  ;;  %s2704_s21 = int_to_ptr.vmem [resolvable:$true] %s2703_s21 }
  0x39   :  { %2829 = vmatpush3.xpose.msk.msra.mxu0 %vm104_vm1, %v72_v1  ;;  %2834 = vmatpush3.xpose.msk.msra.mxu1 %vm104_vm1, %v73_v2  ;;  %v76_v8 = vld [vmem:[#allocation5 + $0x20] sm:$0xff]  ;;  %v59_v9 = vld [vmem:[#allocation2 + $0x18] sm:$0xff]  ;;  %v77_v10 = vld [vmem:[#allocation5 + $0x28] sm:$0xff]  ;;  %s3126_s22 = scalar_lea.vmem %s2704_s21, 2048  ;;  %p3131_p11 = scmp.lt.s32.totalorder %s2704_s21, %s2704_s21 }
  0x3a   :  { %2838 = vmatprep.subr.mxu0 %v3159_v0  ;;  %2843 = vmatprep.subr.mxu1 %v3159_v0  ;;  %v60_v11 = vld [vmem:[#allocation2 + $0x20] sm:$0xff]  ;;  %v78_v12 = vld [vmem:[#allocation5 + $0x30] sm:$0xff]  ;;  %v61_v13 = vld [vmem:[#allocation2 + $0x28] sm:$0xff]  ;;  %p3127_p10 = scmp.ne.s32.totalorder %s2704_s21, %s3126_s22  ;;  %p3132_p12 = scmp.lt.s32.totalorder %s3126_s22, %s3126_s22 }
  0x3b   :  { %v79_v14 = vld [vmem:[#allocation5 + $0x38] sm:$0xff]  ;;  %v62_v15 = vld [vmem:[#allocation2 + $0x30] sm:$0xff]  ;;  %v80_v16 = vld [vmem:[#allocation5 + $0x40] sm:$0xff] }
  0x3c   :  { %2831 = vmatmul.mubr.msk.f32.vlgmr.msra.gmra.mrb[0].mxu0 %vm104_vm1, %v56_v3  ;;  %2836 = vmatmul.mubr.msk.f32.vlgmr.msra.gmra.mrb[0].mxu1 %vm104_vm1, %v57_v4  ;;  %v63_v17 = vld [vmem:[#allocation2 + $0x38] sm:$0xff]  ;;  %v81_v18 = vld [vmem:[#allocation5 + $0x48] sm:$0xff]  ;;  %v64_v19 = vld [vmem:[#allocation2 + $0x40] sm:$0xff]  ;;  %p3133_p13 = por %p3132_p12, %p3131_p11 }
  0x3d   :  { %2839 = vmatpush3.xpose.msk.msra.mxu0 %vm104_vm1, %v74_v5  ;;  %2840 = vmatprep.mubr.msk.f32.mxu0 %vm3160_vm0, %v3159_v0  ;;  %v82_v20 = vld [vmem:[#allocation5 + $0x50] sm:$0xff]  ;;  %v65_v21 = vld [vmem:[#allocation2 + $0x48] sm:$0xff]  ;;  %v83_v22 = vld [vmem:[#allocation5 + $0x58] sm:$0xff] }
  0x3e   :  { %2848 = vmatprep.subr.mxu0 %v3159_v0  ;;  %2844 = vmatpush3.xpose.msk.msra.mxu1 %vm104_vm1, %v75_v6  ;;  %v66_v23 = vld [vmem:[#allocation2 + $0x50] sm:$0xff]  ;;  %v84_v24 = vld [vmem:[#allocation5 + $0x60] sm:$0xff]  ;;  %v67_v25 = vld [vmem:[#allocation2 + $0x58] sm:$0xff]  ;;  %p3134_p0 = pnand %p3133_p13, %p3127_p10 }
  0x3f   :  { %2845 = vmatprep.mubr.msk.f32.mxu1 %vm3160_vm0, %v3159_v0  ;;  %2853 = vmatprep.subr.mxu1 %v3159_v0  ;;  %v85_v26 = vld [vmem:[#allocation5 + $0x68] sm:$0xff]  ;;  %v68_v27 = vld [vmem:[#allocation2 + $0x60] sm:$0xff]  ;;  %v86_v28 = vld [vmem:[#allocation5 + $0x70] sm:$0xff] }
  0x40   :  { %2841 = vmatmul.mubr.msk.f32.vlgmr.msra.gmra.mrb[2].mxu0 %vm104_vm1, %v58_v7  ;;  %v69_v29 = vld [vmem:[#allocation2 + $0x68] sm:$0xff]  ;;  %v87_v30 = vld [vmem:[#allocation5 + $0x78] sm:$0xff]  ;;  %v70_v31 = vld [vmem:[#allocation2 + $0x70] sm:$0xff] }
  0x41   :  { %2849 = vmatpush3.xpose.msk.msra.mxu0 %vm104_vm1, %v76_v8  ;;  %2850 = vmatprep.mubr.msk.f32.mxu0 %vm3160_vm0, %v3159_v0  ;;  %v71_v32 = vld [vmem:[#allocation2 + $0x78] sm:$0xff] }
  0x42   :  { %2846 = vmatmul.mubr.msk.f32.vlgmr.msra.gmra.mrb[2].mxu1 %vm104_vm1, %v59_v9  ;;  %2858 = vmatprep.subr.mxu0 %v3159_v0 }
  0x43   :  { %2854 = vmatpush3.xpose.msk.msra.mxu1 %vm104_vm1, %v77_v10  ;;  %2855 = vmatprep.mubr.msk.f32.mxu1 %vm3160_vm0, %v3159_v0 }
  0x44   :  { %2851 = vmatmul.mubr.msk.f32.vlgmr.msra.gmra.mrb[4].mxu0 %vm104_vm1, %v60_v11  ;;  %2863 = vmatprep.subr.mxu1 %v3159_v0 }
  0x45   :  { %2859 = vmatpush3.xpose.msk.msra.mxu0 %vm104_vm1, %v78_v12  ;;  %2860 = vmatprep.mubr.msk.f32.mxu0 %vm3160_vm0, %v3159_v0 }
  0x46   :  { %2856 = vmatmul.mubr.msk.f32.vlgmr.msra.gmra.mrb[4].mxu1 %vm104_vm1, %v61_v13  ;;  %2868 = vmatprep.subr.mxu0 %v3159_v0 }
  0x47   :  { %2864 = vmatpush3.xpose.msk.msra.mxu1 %vm104_vm1, %v79_v14  ;;  %2865 = vmatprep.mubr.msk.f32.mxu1 %vm3160_vm0, %v3159_v0 }
  0x48   :  { %2861 = vmatmul.mubr.msk.f32.vlgmr.msra.gmra.mrb[6].mxu0 %vm104_vm1, %v62_v15  ;;  %2873 = vmatprep.subr.mxu1 %v3159_v0 }
  0x49   :  { %2869 = vmatpush3.xpose.msk.msra.mxu0 %vm104_vm1, %v80_v16  ;;  %2870 = vmatprep.mubr.msk.f32.mxu0 %vm3160_vm0, %v3159_v0 }
  0x4a   :  { %2866 = vmatmul.mubr.msk.f32.vlgmr.msra.gmra.mrb[6].mxu1 %vm104_vm1, %v63_v17  ;;  %2878 = vmatprep.subr.mxu0 %v3159_v0 }
  0x4b   :  { %2874 = vmatpush3.xpose.msk.msra.mxu1 %vm104_vm1, %v81_v18  ;;  %2875 = vmatprep.mubr.msk.f32.mxu1 %vm3160_vm0, %v3159_v0 }
  0x4c   :  { %2871 = vmatmul.mubr.msk.f32.vlgmr.msra.gmra.mrb[8].mxu0 %vm104_vm1, %v64_v19  ;;  %2883 = vmatprep.subr.mxu1 %v3159_v0 }
  0x4d   :  { %2879 = vmatpush3.xpose.msk.msra.mxu0 %vm104_vm1, %v82_v20  ;;  %2880 = vmatprep.mubr.msk.f32.mxu0 %vm3160_vm0, %v3159_v0 }
  0x4e   :  { %2876 = vmatmul.mubr.msk.f32.vlgmr.msra.gmra.mrb[8].mxu1 %vm104_vm1, %v65_v21  ;;  %2888 = vmatprep.subr.mxu0 %v3159_v0 }
  0x4f   :  { %2884 = vmatpush3.xpose.msk.msra.mxu1 %vm104_vm1, %v83_v22  ;;  %2885 = vmatprep.mubr.msk.f32.mxu1 %vm3160_vm0, %v3159_v0 }
  0x50   :  { %2881 = vmatmul.mubr.msk.f32.vlgmr.msra.gmra.mrb[10].mxu0 %vm104_vm1, %v66_v23  ;;  %2893 = vmatprep.subr.mxu1 %v3159_v0 }
  0x51   :  { %2889 = vmatpush3.xpose.msk.msra.mxu0 %vm104_vm1, %v84_v24  ;;  %2890 = vmatprep.mubr.msk.f32.mxu0 %vm3160_vm0, %v3159_v0 }
  0x52   :  { %2886 = vmatmul.mubr.msk.f32.vlgmr.msra.gmra.mrb[10].mxu1 %vm104_vm1, %v67_v25  ;;  %2898 = vmatprep.subr.mxu0 %v3159_v0 }
  0x53   :  { %2894 = vmatpush3.xpose.msk.msra.mxu1 %vm104_vm1, %v85_v26  ;;  %2895 = vmatprep.mubr.msk.f32.mxu1 %vm3160_vm0, %v3159_v0 }
  0x54   :  { %2891 = vmatmul.mubr.msk.f32.vlgmr.msra.gmra.mrb[12].mxu0 %vm104_vm1, %v68_v27  ;;  %2903 = vmatprep.subr.mxu1 %v3159_v0 }
  0x55   :  { %2899 = vmatpush3.xpose.msk.msra.mxu0 %vm104_vm1, %v86_v28  ;;  %2900 = vmatprep.mubr.msk.f32.mxu0 %vm3160_vm0, %v3159_v0 }
  0x56   :  { %2896 = vmatmul.mubr.msk.f32.vlgmr.msra.gmra.mrb[12].mxu1 %vm104_vm1, %v69_v29  ;;  %2908 = vmatprep.subr.mxu0 %v3159_v0 }
  0x57   :  { %2904 = vmatpush3.xpose.msk.msra.mxu1 %vm104_vm1, %v87_v30  ;;  %2905 = vmatprep.mubr.msk.f32.mxu1 %vm3160_vm0, %v3159_v0 }
  0x58   :  { %2901 = vmatmul.mubr.msk.f32.vlgmr.msra.gmra.mrb[14].mxu0 %vm104_vm1, %v70_v31  ;;  %2913 = vmatprep.subr.mxu1 %v3159_v0 }
  0x59   :  { %2910 = vmatprep.mubr.msk.f32.mxu0 %vm3160_vm0, %v3159_v0 }
  0x5a   :  { %2906 = vmatmul.mubr.msk.f32.vlgmr.msra.gmra.mrb[14].mxu1 %vm104_vm1, %v71_v32 }
  0x5b   :  { %2915 = vmatprep.mubr.msk.f32.mxu1 %vm3160_vm0, %v3159_v0 }
 0x10f   :  { %v177_v33 = vpop.f32.mrb[0].mxu0  ;;  %v253_v34 = vpop.f32.mrb[0].mxu1 }
 0x110   :  { %v3320_v35 = vmul.f32 0.17677669, %v177_v33  ;;  %v2832_v36 = vpop.f32.mrb[1].mxu0  ;;  %v3322_v37 = vmul.f32 0.17677669, %v253_v34  ;;  %v2837_v38 = vpop.f32.mrb[1].mxu1 }
 0x112   :  { %v1338_v39 = vsel %vm1337_vm2, %v3320_v35, -inf  ;;  %v1341_v43 = vsel %vm1337_vm2, %v3322_v37, -inf }
 0x113   :  { %1339 = vmax.xlane.f32.xlu0 %v1338_v39  ;;  %v329_v40 = vpop.f32.mrb[2].mxu0 }
 0x114   :  { %v3326_v41 = vmul.f32 0.17677669, %v329_v40  ;;  %v2842_v42 = vpop.f32.mrb[3].mxu0 }
 0x115   :  { %v405_v44 = vpop.f32.mrb[2].mxu1 }
 0x116   :  { %v3330_v45 = vmul.f32 0.17677669, %v405_v44  ;;  %v1344_v46 = vsel %vm1337_vm2, %v3326_v41, -inf  ;;  %v2847_v47 = vpop.f32.mrb[3].mxu1 }
 0x117   :  { %1342 = vmax.xlane.f32.xlu0 %v1341_v43  ;;  %1345 = vmax.xlane.f32.xlu1 %v1344_v46  ;;  %v481_v48 = vpop.f32.mrb[4].mxu0 }
 0x118   :  { %v3334_v49 = vmul.f32 0.17677669, %v481_v48  ;;  %v2852_v50 = vpop.f32.mrb[5].mxu0  ;;  %v1347_v51 = vsel %vm1337_vm2, %v3330_v45, -inf }
 0x119   :  { %v557_v52 = vpop.f32.mrb[4].mxu1 }
 0x11a   :  { %v3338_v53 = vmul.f32 0.17677669, %v557_v52  ;;  %v1350_v54 = vsel %vm1337_vm2, %v3334_v49, -inf  ;;  %v2857_v55 = vpop.f32.mrb[5].mxu1 }
 0x11b   :  { %1348 = vmax.xlane.f32.xlu1 %v1347_v51  ;;  %1351 = vmax.xlane.f32.xlu0 %v1350_v54  ;;  %v633_v56 = vpop.f32.mrb[6].mxu0 }
 0x11c   :  { %v3342_v57 = vmul.f32 0.17677669, %v633_v56  ;;  %v2862_v58 = vpop.f32.mrb[7].mxu0  ;;  %v1353_v59 = vsel %vm1337_vm2, %v3338_v53, -inf }
 0x11d   :  { %v709_v60 = vpop.f32.mrb[6].mxu1 }
 0x11e   :  { %v3346_v61 = vmul.f32 0.17677669, %v709_v60  ;;  %v1356_v62 = vsel %vm1337_vm2, %v3342_v57, -inf  ;;  %v2867_v63 = vpop.f32.mrb[7].mxu1 }
 0x11f   :  { %1354 = vmax.xlane.f32.xlu1 %v1353_v59  ;;  %1357 = vmax.xlane.f32.xlu0 %v1356_v62  ;;  %v785_v1 = vpop.f32.mrb[8].mxu0 }
 0x120   :  { %v3350_v2 = vmul.f32 0.17677669, %v785_v1  ;;  %v2872_v3 = vpop.f32.mrb[9].mxu0  ;;  %v1359_v4 = vsel %vm1337_vm2, %v3346_v61, -inf }
 0x121   :  { %v861_v5 = vpop.f32.mrb[8].mxu1 }
 0x122   :  { %v3354_v6 = vmul.f32 0.17677669, %v861_v5  ;;  %v1362_v7 = vsel %vm1337_vm2, %v3350_v2, -inf  ;;  %v2877_v8 = vpop.f32.mrb[9].mxu1 }
 0x123   :  { %1360 = vmax.xlane.f32.xlu1 %v1359_v4  ;;  %1363 = vmax.xlane.f32.xlu0 %v1362_v7  ;;  %v937_v9 = vpop.f32.mrb[10].mxu0 }
 0x124   :  { %v3358_v10 = vmul.f32 0.17677669, %v937_v9  ;;  %v2882_v11 = vpop.f32.mrb[11].mxu0  ;;  %v1365_v12 = vsel %vm1337_vm2, %v3354_v6, -inf }
 0x125   :  { %v1013_v13 = vpop.f32.mrb[10].mxu1 }
 0x126   :  { %v3362_v14 = vmul.f32 0.17677669, %v1013_v13  ;;  %v1368_v15 = vsel %vm1337_vm2, %v3358_v10, -inf  ;;  %v2887_v16 = vpop.f32.mrb[11].mxu1 }
 0x127   :  { %1366 = vmax.xlane.f32.xlu1 %v1365_v12  ;;  %1369 = vmax.xlane.f32.xlu0 %v1368_v15  ;;  %v1089_v17 = vpop.f32.mrb[12].mxu0 }
 0x128   :  { %v3366_v18 = vmul.f32 0.17677669, %v1089_v17  ;;  %v2892_v19 = vpop.f32.mrb[13].mxu0  ;;  %v1371_v20 = vsel %vm1337_vm2, %v3362_v14, -inf }
 0x129   :  { %v1165_v21 = vpop.f32.mrb[12].mxu1 }
 0x12a   :  { %v3370_v22 = vmul.f32 0.17677669, %v1165_v21  ;;  %v1374_v23 = vsel %vm1337_vm2, %v3366_v18, -inf  ;;  %v2897_v24 = vpop.f32.mrb[13].mxu1 }
 0x12b   :  { %1372 = vmax.xlane.f32.xlu1 %v1371_v20  ;;  %1375 = vmax.xlane.f32.xlu0 %v1374_v23  ;;  %v1241_v25 = vpop.f32.mrb[14].mxu0 }
 0x12c   :  { %v3374_v26 = vmul.f32 0.17677669, %v1241_v25  ;;  %v1377_v27 = vsel %vm1337_vm2, %v3370_v22, -inf  ;;  %v2902_v28 = vpop.f32.mrb[15].mxu0 }
 0x12d   :  { %v1317_v29 = vpop.f32.mrb[14].mxu1 }
 0x12e   :  { %v3378_v30 = vmul.f32 0.17677669, %v1317_v29  ;;  %v1380_v31 = vsel %vm1337_vm2, %v3374_v26, -inf  ;;  %v2907_v32 = vpop.f32.mrb[15].mxu1 }
 0x12f   :  { %1378 = vmax.xlane.f32.xlu1 %v1377_v27  ;;  %1381 = vmax.xlane.f32.xlu0 %v1380_v31 }
 0x130   :  { %v1383_v33 = vsel %vm1337_vm2, %v3378_v30, -inf }
 0x133   :  { %1384 = vmax.xlane.f32.xlu1 %v1383_v33 }
 0x1a0   :  { %v1340_v34 = vpop.xlane.xlu0 %1339 }
 0x1a1   :  { %v1386_v36 = vsub.f32 %v3320_v35, %v1340_v34 }
 0x1a3   :  { %v1402_v38 = vmul.f32 1.442695, %v1386_v36 }
 0x1a4   :  { %v1343_v39 = vpop.xlane.xlu0 %1342  ;;  %v1346_v40 = vpop.xlane.xlu1 %1345 }
 0x1a5   :  { %2996 = vpow2.f32 %v1402_v38  ;;  %v1387_v42 = vsub.f32 %v3322_v37, %v1343_v39  ;;  %v1388_v43 = vsub.f32 %v3326_v41, %v1346_v40 }
 0x1a7   :  { %v1404_v44 = vmul.f32 1.442695, %v1387_v42  ;;  %v1406_v46 = vmul.f32 1.442695, %v1388_v43 }
 0x1a8   :  { %v1349_v47 = vpop.xlane.xlu1 %1348  ;;  %v1352_v48 = vpop.xlane.xlu0 %1351 }
 0x1a9   :  { %2998 = vpow2.f32 %v1404_v44  ;;  %v1389_v50 = vsub.f32 %v3330_v45, %v1349_v47  ;;  %v1390_v51 = vsub.f32 %v3334_v49, %v1352_v48 }
 0x1aa   :  { %3000 = vpow2.f32 %v1406_v46 }
 0x1ab   :  { %v1408_v52 = vmul.f32 1.442695, %v1389_v50  ;;  %v1410_v35 = vmul.f32 1.442695, %v1390_v51  ;;  %v88_v51 = vld [vmem:[#allocation7] sm:$0xff] }
 0x1ac   :  { %v1355_v54 = vpop.xlane.xlu1 %1354  ;;  %v1358_v55 = vpop.xlane.xlu0 %1357  ;;  %2909 = vmatpush3.msra.mxu0 %v88_v51 }
 0x1ad   :  { %3002 = vpow2.f32 %v1408_v52  ;;  %v1391_v56 = vsub.f32 %v3338_v53, %v1355_v54  ;;  %v1392_v37 = vsub.f32 %v3342_v57, %v1358_v55  ;;  %2918 = vmatprep.subr.mxu0 %v3159_v0 }
 0x1ae   :  { %3004 = vpow2.f32 %v1410_v35 }
 0x1af   :  { %v3391_v41 = vpop.eup %2996  ;;  %v1412_v58 = vmul.f32 1.442695, %v1391_v56  ;;  %v1414_v59 = vmul.f32 1.442695, %v1392_v37  ;;  %v89_v56 = vld [vmem:[#allocation7 + $0x8] sm:$0xff] }
 0x1b0   :  { %v1361_v60 = vpop.xlane.xlu1 %1360  ;;  %v1364_v62 = vpop.xlane.xlu0 %1363  ;;  %v1434_v45 = vsel %vm1337_vm2, %v3391_v41, 0.0  ;;  %2914 = vmatpush3.msra.mxu1 %v89_v56 }
 0x1b1   :  { %3006 = vpow2.f32 %v1412_v58  ;;  %v1393_v49 = vsub.f32 %v3346_v61, %v1361_v60  ;;  %v1394_v63 = vsub.f32 %v3350_v2, %v1364_v62  ;;  %1435 = vadd.xlane.f32.xlu0 %v1434_v45  ;;  %2923 = vmatprep.subr.mxu1 %v3159_v0 }
 0x1b2   :  { %3008 = vpow2.f32 %v1414_v59 }
 0x1b3   :  { %v3397_v53 = vpop.eup %2998  ;;  %v1416_v57 = vmul.f32 1.442695, %v1393_v49  ;;  %v1418_v1 = vmul.f32 1.442695, %v1394_v63 }
 0x1b4   :  { %v3399_v3 = vpop.eup %3000  ;;  %v1367_v4 = vpop.xlane.xlu1 %1366  ;;  %v1437_v7 = vsel %vm1337_vm2, %v3397_v53, 0.0 }
 0x1b5   :  { %v1370_v5 = vpop.xlane.xlu0 %1369  ;;  %3010 = vpow2.f32 %v1416_v57  ;;  %v1395_v8 = vsub.f32 %v3354_v6, %v1367_v4  ;;  %1438 = vadd.xlane.f32.xlu1 %v1437_v7  ;;  %v1440_v2 = vsel %vm1337_vm2, %v3399_v3, 0.0 }
 0x1b6   :  { %v1396_v61 = vsub.f32 %v3358_v10, %v1370_v5  ;;  %3012 = vpow2.f32 %v1418_v1  ;;  %1441 = vadd.xlane.f32.xlu0 %v1440_v2  ;;  %v90_v1 = vld [vmem:[#allocation7 + $0x10] sm:$0xff]  ;;  %v91_v2 = vld [vmem:[#allocation7 + $0x18] sm:$0xff] }
 0x1b7   :  { %v3407_v9 = vpop.eup %3002  ;;  %v1420_v11 = vmul.f32 1.442695, %v1395_v8 }
 0x1b8   :  { %v1422_v12 = vmul.f32 1.442695, %v1396_v61  ;;  %v3409_v13 = vpop.eup %3004  ;;  %v1373_v15 = vpop.xlane.xlu1 %1372  ;;  %v1443_v17 = vsel %vm1337_vm2, %v3407_v9, 0.0 }
 0x1b9   :  { %v1376_v16 = vpop.xlane.xlu0 %1375  ;;  %3014 = vpow2.f32 %v1420_v11  ;;  %v1397_v6 = vsub.f32 %v3362_v14, %v1373_v15  ;;  %1444 = vadd.xlane.f32.xlu1 %v1443_v17  ;;  %v1446_v19 = vsel %vm1337_vm2, %v3409_v13, 0.0 }
 0x1ba   :  { %v1398_v10 = vsub.f32 %v3366_v18, %v1376_v16  ;;  %3016 = vpow2.f32 %v1422_v12  ;;  %1447 = vadd.xlane.f32.xlu0 %v1446_v19  ;;  %v92_v12 = vld [vmem:[#allocation7 + $0x20] sm:$0xff]  ;;  %v94_v19 = vld [vmem:[#allocation7 + $0x30] sm:$0xff] }
 0x1bb   :  { %v3417_v20 = vpop.eup %3006  ;;  %v1424_v21 = vmul.f32 1.442695, %v1397_v6  ;;  %v93_v6 = vld [vmem:[#allocation7 + $0x28] sm:$0xff] }
 0x1bc   :  { %v1426_v23 = vmul.f32 1.442695, %v1398_v10  ;;  %v3419_v24 = vpop.eup %3008  ;;  %v1379_v25 = vpop.xlane.xlu1 %1378  ;;  %v1449_v28 = vsel %vm1337_vm2, %v3417_v20, 0.0 }
 0x1bd   :  { %v1382_v27 = vpop.xlane.xlu0 %1381  ;;  %3018 = vpow2.f32 %v1424_v21  ;;  %v1399_v14 = vsub.f32 %v3370_v22, %v1379_v25  ;;  %1450 = vadd.xlane.f32.xlu1 %v1449_v28  ;;  %v1452_v29 = vsel %vm1337_vm2, %v3419_v24, 0.0  ;;  %v95_v25 = vld [vmem:[#allocation7 + $0x38] sm:$0xff] }
 0x1be   :  { %v1400_v18 = vsub.f32 %v3374_v26, %v1382_v27  ;;  %3020 = vpow2.f32 %v1426_v23  ;;  %1453 = vadd.xlane.f32.xlu0 %v1452_v29 }
 0x1bf   :  { %v3427_v31 = vpop.eup %3010  ;;  %v1428_v32 = vmul.f32 1.442695, %v1399_v14  ;;  %v96_v14 = vld [vmem:[#allocation7 + $0x40] sm:$0xff] }
 0x1c0   :  { %v1430_v33 = vmul.f32 1.442695, %v1400_v18  ;;  %v3429_v34 = vpop.eup %3012  ;;  %v1385_v36 = vpop.xlane.xlu1 %1384  ;;  %v1455_v38 = vsel %vm1337_vm2, %v3427_v31, 0.0 }
 0x1c1   :  { %3022 = vpow2.f32 %v1428_v32  ;;  %v1401_v22 = vsub.f32 %v3378_v30, %v1385_v36  ;;  %1456 = vadd.xlane.f32.xlu1 %v1455_v38  ;;  %v1458_v26 = vsel %vm1337_vm2, %v3429_v34, 0.0  ;;  %v97_v32 = vld [vmem:[#allocation7 + $0x48] sm:$0xff]  ;;  %v98_v38 = vld [vmem:[#allocation7 + $0x50] sm:$0xff] }
 0x1c2   :  { %3024 = vpow2.f32 %v1430_v33  ;;  %1459 = vadd.xlane.f32.xlu0 %v1458_v26 }
 0x1c3   :  { %v3436_v39 = vpop.eup %3014  ;;  %v1432_v40 = vmul.f32 1.442695, %v1401_v22 }
 0x1c4   :  { %v3438_v42 = vpop.eup %3016  ;;  %v1461_v43 = vsel %vm1337_vm2, %v3436_v39, 0.0 }
 0x1c5   :  { %3026 = vpow2.f32 %v1432_v40  ;;  %1462 = vadd.xlane.f32.xlu1 %v1461_v43  ;;  %v1464_v44 = vsel %vm1337_vm2, %v3438_v42, 0.0  ;;  %v99_v40 = vld [vmem:[#allocation7 + $0x58] sm:$0xff] }
 0x1c6   :  { %1465 = vadd.xlane.f32.xlu0 %v1464_v44  ;;  %v100_v44 = vld [vmem:[#allocation7 + $0x60] sm:$0xff] }
 0x1c7   :  { %v3444_v30 = vpop.eup %3018 }
 0x1c8   :  { %v3446_v46 = vpop.eup %3020  ;;  %v1467_v47 = vsel %vm1337_vm2, %v3444_v30, 0.0 }
 0x1c9   :  { %1468 = vadd.xlane.f32.xlu1 %v1467_v47  ;;  %v1470_v48 = vsel %vm1337_vm2, %v3446_v46, 0.0 }
 0x1ca   :  { %1471 = vadd.xlane.f32.xlu0 %v1470_v48 }
 0x1cb   :  { %v3452_v50 = vpop.eup %3022 }
 0x1cc   :  { %v3454_v52 = vpop.eup %3024  ;;  %v1473_v35 = vsel %vm1337_vm2, %v3452_v50, 0.0 }
 0x1cd   :  { %1474 = vadd.xlane.f32.xlu1 %v1473_v35  ;;  %v1476_v54 = vsel %vm1337_vm2, %v3454_v52, 0.0  ;;  %v102_v35 = vld [vmem:[#allocation7 + $0x70] sm:$0xff] }
 0x1ce   :  { %1477 = vadd.xlane.f32.xlu0 %v1476_v54 }
 0x1cf   :  { %v3461_v55 = vpop.eup %3026 }
 0x1d0   :  { %v1479_v37 = vsel %vm1337_vm2, %v3461_v55, 0.0 }
 0x1d1   :  { %1480 = vadd.xlane.f32.xlu1 %v1479_v37 }
 0x23e   :  { %v1436_v58 = vpop.xlane.xlu0 %1435 }
 0x23f   :  { %3028 = vrcp.f32 %v1436_v58 }
 0x242   :  { %v1439_v59 = vpop.xlane.xlu1 %1438 }
 0x243   :  { %3030 = vrcp.f32 %v1439_v59  ;;  %v1442_v60 = vpop.xlane.xlu0 %1441 }
 0x244   :  { %3032 = vrcp.f32 %v1442_v60 }
 0x246   :  { %v1445_v62 = vpop.xlane.xlu1 %1444 }
 0x247   :  { %3034 = vrcp.f32 %v1445_v62  ;;  %v1448_v45 = vpop.xlane.xlu0 %1447 }
 0x248   :  { %3036 = vrcp.f32 %v1448_v45 }
 0x249   :  { %v3029_v49 = vpop.eup %3028 }
 0x24a   :  { %v1498_v63 = vmul.f32 %v3029_v49, %v3391_v41  ;;  %v1451_v57 = vpop.xlane.xlu1 %1450 }
 0x24b   :  { %3038 = vrcp.f32 %v1451_v57  ;;  %v1454_v4 = vpop.xlane.xlu0 %1453 }
 0x24c   :  { %3040 = vrcp.f32 %v1454_v4  ;;  %2911 = vmatmul.mubr.msk.f32.vlgmr.msra.gmra.mrb[16].mxu0 %vm1337_vm2, %v1498_v63 }
 0x24d   :  { %v3031_v5 = vpop.eup %3030  ;;  %2919 = vmatpush3.msra.mxu0 %v90_v1  ;;  %2920 = vmatprep.mubr.msk.f32.mxu0 %vm3160_vm0, %v3159_v0 }
 0x24e   :  { %v3033_v7 = vpop.eup %3032  ;;  %v1499_v8 = vmul.f32 %v3031_v5, %v3397_v53  ;;  %v1457_v61 = vpop.xlane.xlu1 %1456  ;;  %2928 = vmatprep.subr.mxu0 %v3159_v0 }
 0x24f   :  { %v1500_v41 = vmul.f32 %v3033_v7, %v3399_v3  ;;  %3042 = vrcp.f32 %v1457_v61  ;;  %v1460_v11 = vpop.xlane.xlu0 %1459 }
 0x250   :  { %3044 = vrcp.f32 %v1460_v11  ;;  %2916 = vmatmul.mubr.msk.f32.vlgmr.msra.gmra.mrb[16].mxu1 %vm1337_vm2, %v1499_v8 }
 0x251   :  { %v3035_v15 = vpop.eup %3034  ;;  %2921 = vmatmul.mubr.msk.f32.vlgmr.msra.gmra.mrb[18].mxu0 %vm1337_vm2, %v1500_v41  ;;  %2924 = vmatpush3.msra.mxu1 %v91_v2 }
 0x252   :  { %v3037_v16 = vpop.eup %3036  ;;  %v1501_v17 = vmul.f32 %v3035_v15, %v3407_v9  ;;  %v1463_v53 = vpop.xlane.xlu1 %1462  ;;  %2925 = vmatprep.mubr.msk.f32.mxu1 %vm3160_vm0, %v3159_v0  ;;  %2929 = vmatpush3.msra.mxu0 %v92_v12 }
 0x253   :  { %v1502_v3 = vmul.f32 %v3037_v16, %v3409_v13  ;;  %3046 = vrcp.f32 %v1463_v53  ;;  %v1466_v10 = vpop.xlane.xlu0 %1465  ;;  %2930 = vmatprep.mubr.msk.f32.mxu0 %vm3160_vm0, %v3159_v0  ;;  %2933 = vmatprep.subr.mxu1 %v3159_v0 }
 0x254   :  { %3048 = vrcp.f32 %v1466_v10  ;;  %2926 = vmatmul.mubr.msk.f32.vlgmr.msra.gmra.mrb[18].mxu1 %vm1337_vm2, %v1501_v17  ;;  %2938 = vmatprep.subr.mxu0 %v3159_v0 }
 0x255   :  { %v3039_v9 = vpop.eup %3038  ;;  %2931 = vmatmul.mubr.msk.f32.vlgmr.msra.gmra.mrb[20].mxu0 %vm1337_vm2, %v1502_v3  ;;  %2934 = vmatpush3.msra.mxu1 %v93_v6 }
 0x256   :  { %v3041_v21 = vpop.eup %3040  ;;  %v1503_v13 = vmul.f32 %v3039_v9, %v3417_v20  ;;  %v1469_v23 = vpop.xlane.xlu1 %1468  ;;  %2935 = vmatprep.mubr.msk.f32.mxu1 %vm3160_vm0, %v3159_v0  ;;  %2939 = vmatpush3.msra.mxu0 %v94_v19 }
 0x257   :  { %v1504_v27 = vmul.f32 %v3041_v21, %v3419_v24  ;;  %3050 = vrcp.f32 %v1469_v23  ;;  %v1472_v28 = vpop.xlane.xlu0 %1471  ;;  %2940 = vmatprep.mubr.msk.f32.mxu0 %vm3160_vm0, %v3159_v0  ;;  %2943 = vmatprep.subr.mxu1 %v3159_v0 }
 0x258   :  { %3052 = vrcp.f32 %v1472_v28  ;;  %2936 = vmatmul.mubr.msk.f32.vlgmr.msra.gmra.mrb[20].mxu1 %vm1337_vm2, %v1503_v13  ;;  %2948 = vmatprep.subr.mxu0 %v3159_v0 }
 0x259   :  { %v3043_v20 = vpop.eup %3042  ;;  %2941 = vmatmul.mubr.msk.f32.vlgmr.msra.gmra.mrb[22].mxu0 %vm1337_vm2, %v1504_v27  ;;  %2944 = vmatpush3.msra.mxu1 %v95_v25 }
 0x25a   :  { %v3045_v18 = vpop.eup %3044  ;;  %v1505_v24 = vmul.f32 %v3043_v20, %v3427_v31  ;;  %v1475_v29 = vpop.xlane.xlu1 %1474  ;;  %2945 = vmatprep.mubr.msk.f32.mxu1 %vm3160_vm0, %v3159_v0  ;;  %2949 = vmatpush3.msra.mxu0 %v96_v14 }
 0x25b   :  { %v1506_v33 = vmul.f32 %v3045_v18, %v3429_v34  ;;  %3054 = vrcp.f32 %v1475_v29  ;;  %v1478_v36 = vpop.xlane.xlu0 %1477  ;;  %2950 = vmatprep.mubr.msk.f32.mxu0 %vm3160_vm0, %v3159_v0  ;;  %2953 = vmatprep.subr.mxu1 %v3159_v0 }
 0x25c   :  { %3056 = vrcp.f32 %v1478_v36  ;;  %2946 = vmatmul.mubr.msk.f32.vlgmr.msra.gmra.mrb[22].mxu1 %vm1337_vm2, %v1505_v24  ;;  %2958 = vmatprep.subr.mxu0 %v3159_v0 }
 0x25d   :  { %v3047_v31 = vpop.eup %3046  ;;  %2951 = vmatmul.mubr.msk.f32.vlgmr.msra.gmra.mrb[24].mxu0 %vm1337_vm2, %v1506_v33  ;;  %2954 = vmatpush3.msra.mxu1 %v97_v32 }
 0x25e   :  { %v3049_v22 = vpop.eup %3048  ;;  %v1507_v34 = vmul.f32 %v3047_v31, %v3436_v39  ;;  %v1481_v26 = vpop.xlane.xlu1 %1480  ;;  %2955 = vmatprep.mubr.msk.f32.mxu1 %vm3160_vm0, %v3159_v0  ;;  %2959 = vmatpush3.msra.mxu0 %v98_v38 }
 0x25f   :  { %v1508_v43 = vmul.f32 %v3049_v22, %v3438_v42  ;;  %3058 = vrcp.f32 %v1481_v26  ;;  %2960 = vmatprep.mubr.msk.f32.mxu0 %vm3160_vm0, %v3159_v0  ;;  %2963 = vmatprep.subr.mxu1 %v3159_v0  ;;  %v101_v42 = vld [vmem:[#allocation7 + $0x68] sm:$0xff] }
 0x260   :  { %2956 = vmatmul.mubr.msk.f32.vlgmr.msra.gmra.mrb[24].mxu1 %vm1337_vm2, %v1507_v34  ;;  %2968 = vmatprep.subr.mxu0 %v3159_v0 }
 0x261   :  { %v3051_v39 = vpop.eup %3050  ;;  %2961 = vmatmul.mubr.msk.f32.vlgmr.msra.gmra.mrb[26].mxu0 %vm1337_vm2, %v1508_v43  ;;  %2964 = vmatpush3.msra.mxu1 %v99_v40 }
 0x262   :  { %v3053_v47 = vpop.eup %3052  ;;  %v1509_v48 = vmul.f32 %v3051_v39, %v3444_v30  ;;  %2965 = vmatprep.mubr.msk.f32.mxu1 %vm3160_vm0, %v3159_v0  ;;  %2969 = vmatpush3.msra.mxu0 %v100_v44 }
 0x263   :  { %v1510_v51 = vmul.f32 %v3053_v47, %v3446_v46  ;;  %2970 = vmatprep.mubr.msk.f32.mxu0 %vm3160_vm0, %v3159_v0  ;;  %2973 = vmatprep.subr.mxu1 %v3159_v0  ;;  %v103_v46 = vld [vmem:[#allocation7 + $0x78] sm:$0xff] }
 0x264   :  { %2966 = vmatmul.mubr.msk.f32.vlgmr.msra.gmra.mrb[26].mxu1 %vm1337_vm2, %v1509_v48  ;;  %2978 = vmatprep.subr.mxu0 %v3159_v0 }
 0x265   :  { %v3055_v54 = vpop.eup %3054  ;;  %2971 = vmatmul.mubr.msk.f32.vlgmr.msra.gmra.mrb[28].mxu0 %vm1337_vm2, %v1510_v51  ;;  %2974 = vmatpush3.msra.mxu1 %v101_v42 }
 0x266   :  { %v3057_v30 = vpop.eup %3056  ;;  %v1511_v56 = vmul.f32 %v3055_v54, %v3452_v50  ;;  %2975 = vmatprep.mubr.msk.f32.mxu1 %vm3160_vm0, %v3159_v0  ;;  %2979 = vmatpush3.msra.mxu0 %v102_v35 }
 0x267   :  { %v1512_v37 = vmul.f32 %v3057_v30, %v3454_v52  ;;  %2980 = vmatprep.mubr.msk.f32.mxu0 %vm3160_vm0, %v3159_v0  ;;  %2983 = vmatprep.subr.mxu1 %v3159_v0 }
 0x268   :  { %2976 = vmatmul.mubr.msk.f32.vlgmr.msra.gmra.mrb[28].mxu1 %vm1337_vm2, %v1511_v56 }
 0x269   :  { %v3059_v58 = vpop.eup %3058  ;;  %2981 = vmatmul.mubr.msk.f32.vlgmr.msra.gmra.mrb[30].mxu0 %vm1337_vm2, %v1512_v37  ;;  %2984 = vmatpush3.msra.mxu1 %v103_v46 }
 0x26a   :  { %v1513_v50 = vmul.f32 %v3059_v58, %v3461_v55  ;;  %2985 = vmatprep.mubr.msk.f32.mxu1 %vm3160_vm0, %v3159_v0 }
 0x26c   :  { %2986 = vmatmul.mubr.msk.f32.vlgmr.msra.gmra.mrb[30].mxu1 %vm1337_vm2, %v1513_v50 }
 0x31f   :  { %v1583_v59 = vpop.f32.mrb[16].mxu0 }
 0x320   :  { %2682 = vst.msk [vmem:[#allocation8] sm:$0xff] %vm104_vm1, %v1583_v59  ;;  %v2912_v52 = vpop.f32.mrb[17].mxu0 }
 0x323   :  { %v1656_v60 = vpop.f32.mrb[16].mxu1 }
 0x324   :  { %2683 = vst.msk [vmem:[#allocation8 + $0x8] sm:$0xff] %vm104_vm1, %v1656_v60  ;;  %v1729_v62 = vpop.f32.mrb[18].mxu0  ;;  %v2917_v45 = vpop.f32.mrb[17].mxu1 }
 0x325   :  { %2684 = vst.msk [vmem:[#allocation8 + $0x10] sm:$0xff] %vm104_vm1, %v1729_v62  ;;  %v2922_v49 = vpop.f32.mrb[19].mxu0 }
 0x327   :  { %v1802_v63 = vpop.f32.mrb[18].mxu1 }
 0x328   :  { %2685 = vst.msk [vmem:[#allocation8 + $0x18] sm:$0xff] %vm104_vm1, %v1802_v63  ;;  %v1875_v55 = vpop.f32.mrb[20].mxu0  ;;  %v2927_v57 = vpop.f32.mrb[19].mxu1 }
 0x329   :  { %2686 = vst.msk [vmem:[#allocation8 + $0x20] sm:$0xff] %vm104_vm1, %v1875_v55  ;;  %v2932_v0 = vpop.f32.mrb[21].mxu0 }
 0x32b   :  { %v1948_v1 = vpop.f32.mrb[20].mxu1 }
 0x32c   :  { %2687 = vst.msk [vmem:[#allocation8 + $0x28] sm:$0xff] %vm104_vm1, %v1948_v1  ;;  %v2021_v4 = vpop.f32.mrb[22].mxu0  ;;  %v2937_v5 = vpop.f32.mrb[21].mxu1 }
 0x32d   :  { %2688 = vst.msk [vmem:[#allocation8 + $0x30] sm:$0xff] %vm104_vm1, %v2021_v4  ;;  %v2942_v7 = vpop.f32.mrb[23].mxu0 }
 0x32f   :  { %v2094_v8 = vpop.f32.mrb[22].mxu1 }
 0x330   :  { %2689 = vst.msk [vmem:[#allocation8 + $0x38] sm:$0xff] %vm104_vm1, %v2094_v8  ;;  %v2167_v61 = vpop.f32.mrb[24].mxu0  ;;  %v2947_v2 = vpop.f32.mrb[23].mxu1 }
 0x331   :  { %2690 = vst.msk [vmem:[#allocation8 + $0x40] sm:$0xff] %vm104_vm1, %v2167_v61  ;;  %v2952_v41 = vpop.f32.mrb[25].mxu0 }
 0x333   :  { %v2240_v11 = vpop.f32.mrb[24].mxu1 }
 0x334   :  { %2691 = vst.msk [vmem:[#allocation8 + $0x48] sm:$0xff] %vm104_vm1, %v2240_v11  ;;  %v2313_v12 = vpop.f32.mrb[26].mxu0  ;;  %v2957_v15 = vpop.f32.mrb[25].mxu1 }
 0x335   :  { %2692 = vst.msk [vmem:[#allocation8 + $0x50] sm:$0xff] %vm104_vm1, %v2313_v12  ;;  %v2962_v16 = vpop.f32.mrb[27].mxu0 }
 0x337   :  { %v2386_v17 = vpop.f32.mrb[26].mxu1 }
 0x338   :  { %2693 = vst.msk [vmem:[#allocation8 + $0x58] sm:$0xff] %vm104_vm1, %v2386_v17  ;;  %v2459_v53 = vpop.f32.mrb[28].mxu0  ;;  %v2967_v6 = vpop.f32.mrb[27].mxu1 }
 0x339   :  { %2694 = vst.msk [vmem:[#allocation8 + $0x60] sm:$0xff] %vm104_vm1, %v2459_v53  ;;  %v2972_v3 = vpop.f32.mrb[29].mxu0 }
 0x33b   :  { %v2532_v10 = vpop.f32.mrb[28].mxu1 }
 0x33c   :  { %2695 = vst.msk [vmem:[#allocation8 + $0x68] sm:$0xff] %vm104_vm1, %v2532_v10  ;;  %v2605_v19 = vpop.f32.mrb[30].mxu0  ;;  %v2977_v9 = vpop.f32.mrb[29].mxu1 }
 0x33d   :  { %2696 = vst.msk [vmem:[#allocation8 + $0x70] sm:$0xff] %vm104_vm1, %v2605_v19  ;;  %v2982_v21 = vpop.f32.mrb[31].mxu0 }
 0x33f   :  { %v2678_v13 = vpop.f32.mrb[30].mxu1 }
 0x340   :  { %2697 = vst.msk [vmem:[#allocation8 + $0x78] sm:$0xff] %vm104_vm1, %v2678_v13  ;;  %v2987_v23 = vpop.f32.mrb[31].mxu1 }
 0x341   :  { %3137 = shalt.err (!%p3134_p0)
}
 0x342   :  { %s3138_s27 = scalar_lea.hbm %s3572_s3, 2048 }
 0x343   :  { %p3139_p1 = scmp.ne.s32.totalorder %s3572_s3, %s3138_s27  ;;  %p3142_p2 = scmp.lt.u32.totalorder %s3138_s27, %s3572_s3 }
 0x345   :  { %p3144_p3 = pnand %p3142_p2, %p3139_p1 }
 0x347   :  { %3147 = shalt.err (!%p3144_p3)
}
 0x348   :  { %2709 = dma.vmem_to_hbm [thread:$0]  %s2704_s21, 2048, %s3572_s3, [#allocation4], %s3156_s24, %s3156_s24, %s3157_s25  }
 0x349   :  { %3152 = dma.done.wait [#allocation4], 2048  }
 0x34a   :  { %3153 = vsyncadd [#allocation4], 4294965248 }
 0x34b   :  { %2713 = vsyncpa [#allocation3], 1 }
 0x34c   :  { %2714 = vsyncpa [#allocation6], 1 }
 0x34d   :  { %2715 = vsyncpa [#allocation4], 1 }

</bundles_post_ra>
